<compile_context>
chip_gen: v5e
topology: v5e:2x2
jax: 0.10.0
libtpu: 0.0.40
codegen_flags: <defaults>
</compile_context>

<pallas_src>
import functools
import math

import jax
import jax.numpy as jnp
from jax.experimental import pallas as pl
from jax.experimental.pallas import tpu as pltpu

EPS = 1e-5              # torch.nn.LayerNorm default eps
NEG_INF = -1e30         # key-mask additive constant (kept in f32; do NOT move to bf16)


def _round_up(x, m):
    return ((x + m - 1) // m) * m


@functools.lru_cache(maxsize=None)
def _vmem_limit_bytes():
    # Per-generation VMEM budget: leave ~24 MiB headroom for compiler scratch / double
    # buffers; cap at 100 MiB on the 128 MiB generations (v5e/v6e), ~40 MiB on v7x.
    try:
        cap = int(pltpu.get_tpu_info().vmem_capacity_bytes)
    except Exception:
        cap = 64 * 1024 * 1024
    return int(max(32 * 1024 * 1024, min(cap - 24 * 1024 * 1024, 100 * 1024 * 1024)))


def _cparams(sem):
    return pltpu.CompilerParams(dimension_semantics=sem,
                                vmem_limit_bytes=_vmem_limit_bytes())


def _choose_tl(L):
    # Small L: one tile rounded to 16 (bf16 sublane packing granularity).
    # Long L on v6e/v7x: 256-row tiles match the 2x256 MXU if padding waste is small.
    # NOTE: with B == 1 and a single token tile only one v7x TensorCore gets work.
    if L <= 128:
        return _round_up(L, 16)
    if L >= 512 and (_round_up(L, 256) - L) <= 32:
        return 256
    return 128


def _ln(x, w, b):
    # LayerNorm kept in f32 (only MXU operands get cast to bf16).
    mu = jnp.mean(x, axis=-1, keepdims=True)
    var = jnp.mean(jnp.square(x - mu), axis=-1, keepdims=True)
    return (x - mu) * jax.lax.rsqrt(var + EPS) * w + b


# ----------------------------- Pallas kernels -----------------------------

def embed_kernel(xp_ref, w_ref, bias_ref, lnw_ref, lnb_ref, o_ref):
    # Fused: patch-embed matmul + (cls/pos) bias + ln_pre, per (batch, token-tile).
    # Padded rows are all-zero -> LN maps them to the LN bias; they are masked as keys
    # and sliced off at the end, never read as real tokens.
    x = jnp.dot(xp_ref[0], w_ref[...], preferred_element_type=jnp.float32) + bias_ref[...]
    o_ref[0] = _ln(x, lnw_ref[...], lnb_ref[...]).astype(o_ref.dtype)


def kv_kernel(x_ref, ln1w, ln1b, wkv_ref, bkv_ref, k_ref, v_ref, *, heads):
    # ln1 + fused K/V projection; outputs head-major [heads, TLk, hd] bf16 tiles so the
    # attention kernel never has to re-split / transpose the full K/V per query tile.
    TLk, D = x_ref.shape[1], x_ref.shape[2]
    hd = D // heads
    h = _ln(x_ref[0].astype(jnp.float32), ln1w[...], ln1b[...]).astype(jnp.bfloat16)
    kv = (jnp.dot(h, wkv_ref[...], preferred_element_type=jnp.float32)
          + bkv_ref[...]).astype(jnp.bfloat16)
    k_ref[0] = kv[:, :D].reshape(TLk, heads, hd).transpose(1, 0, 2)
    v_ref[0] = kv[:, D:].reshape(TLk, heads, hd).transpose(1, 0, 2)


def attn_kernel(x_ref, ln1w, ln1b, wq_ref, bq_ref, k_ref, v_ref, kmask_ref,
                wo_ref, bo_ref, o_ref, *, heads):
    # Fused ln1 + q projection (scale pre-baked) + multi-head attention against the full
    # head-major K/V + out-projection + residual add, per (batch, query-tile).
    TL, D = x_ref.shape[1], x_ref.shape[2]
    Lkp = k_ref.shape[2]
    hd = D // heads

    xr = x_ref[0].astype(jnp.float32)                      # residual (bf16 in HBM)
    h = _ln(xr, ln1w[...], ln1b[...]).astype(jnp.bfloat16)
    q = (jnp.dot(h, wq_ref[...], preferred_element_type=jnp.float32) + bq_ref[...])
    q = q.astype(jnp.bfloat16).reshape(TL, heads, hd).transpose(1, 0, 2)   # (h, TL, hd)

    k = k_ref[0]                                           # (heads, Lkp, hd) bf16
    v = v_ref[0]

    s = jnp.einsum("hqd,hkd->hqk", q, k, preferred_element_type=jnp.float32)
    s = s + kmask_ref[...].reshape(1, 1, Lkp)              # mask padded keys (f32)
    s = s - jnp.max(s, axis=-1, keepdims=True)
    e = jnp.exp(s)
    p = e * pl.reciprocal(jnp.sum(e, axis=-1, keepdims=True), approx=True)

    a = jnp.einsum("hqk,hkd->hqd", p.astype(jnp.bfloat16), v,
                   preferred_element_type=jnp.float32)
    a = a.transpose(1, 0, 2).reshape(TL, D).astype(jnp.bfloat16)

    out = xr + jnp.dot(a, wo_ref[...], preferred_element_type=jnp.float32) + bo_ref[...]
    o_ref[0] = out.astype(o_ref.dtype)


def mlp_kernel_resident(y_ref, ln2w, ln2b, w1_ref, b1_ref, w2_ref, b2_ref, o_ref):
    # MLP with fully resident weights (v5e/v6e or small widths).
    y = y_ref[0].astype(jnp.float32)
    h = _ln(y, ln2w[...], ln2b[...]).astype(jnp.bfloat16)
    m = jnp.dot(h, w1_ref[...], preferred_element_type=jnp.float32) + b1_ref[...]
    m = m * jax.nn.sigmoid(1.702 * m)                      # QuickGELU, f32
    out = y + jnp.dot(m.astype(jnp.bfloat16), w2_ref[...],
                      preferred_element_type=jnp.float32) + b2_ref[...]
    o_ref[0] = out.astype(o_ref.dtype)


def mlp_kernel_streamed(y_ref, ln2w, ln2b, w1_ref, b1_ref, w2_ref, b2_ref, o_ref,
                        h_scr, acc_scr):
    # Panel-streamed MLP for large widths / v7x: whole padded sequence per batch element,
    # 4D hidden dim streamed along the last ("arbitrary") grid axis -> each weight panel is
    # DMA'd once per batch element instead of once per (batch, token-tile).
    f = pl.program_id(1)

    @pl.when(f == 0)
    def _():
        y = y_ref[0].astype(jnp.float32)
        h_scr[...] = _ln(y, ln2w[...], ln2b[...]).astype(jnp.bfloat16)
        acc_scr[...] = y + b2_ref[...]                     # residual + final bias

    m = jnp.dot(h_scr[...], w1_ref[...], preferred_element_type=jnp.float32) + b1_ref[...]
    m = m * jax.nn.sigmoid(1.702 * m)
    acc_scr[...] += jnp.dot(m.astype(jnp.bfloat16), w2_ref[...],
                            preferred_element_type=jnp.float32)

    @pl.when(f == pl.num_programs(1) - 1)
    def _():
        o_ref[0] = acc_scr[...].astype(o_ref.dtype)


def post_kernel(x_ref, lnw_ref, lnb_ref, proj_ref, o_ref):
    h = _ln(x_ref[0].astype(jnp.float32), lnw_ref[...], lnb_ref[...]).astype(jnp.bfloat16)
    o_ref[0] = jnp.dot(h, proj_ref[...], preferred_element_type=jnp.float32)


# ------------------------------- wrappers ---------------------------------

def fused_embed(xp, w_pe, token_bias, lnw, lnb, TL):
    B, Lp, Kp = xp.shape
    D = w_pe.shape[1]
    return pl.pallas_call(
        embed_kernel,
        out_shape=jax.ShapeDtypeStruct((B, Lp, D), jnp.bfloat16),
        grid=(B, Lp // TL),
        in_specs=[pl.BlockSpec((1, TL, Kp), lambda b, l: (b, l, 0)),
                  pl.BlockSpec((Kp, D), lambda b, l: (0, 0)),
                  pl.BlockSpec((TL, D), lambda b, l: (l, 0)),
                  pl.BlockSpec((1, D), lambda b, l: (0, 0)),
                  pl.BlockSpec((1, D), lambda b, l: (0, 0))],
        out_specs=pl.BlockSpec((1, TL, D), lambda b, l: (b, l, 0)),
        compiler_params=_cparams(("parallel", "parallel")),
    )(xp, w_pe, token_bias, lnw, lnb)


def apply_kv(x, kb, Lkp, heads, hd):
    B, Lp, D = x.shape
    nkv = 2 if (Lkp % 32 == 0 and Lkp >= 256) else 1       # a little megacore parallelism
    TLk = Lkp // nkv
    kv_shape = jax.ShapeDtypeStruct((B, heads, Lkp, hd), jnp.bfloat16)
    kern = functools.partial(kv_kernel, heads=heads)
    return pl.pallas_call(
        kern,
        out_shape=[kv_shape, kv_shape],
        grid=(B, nkv),
        in_specs=[pl.BlockSpec((1, TLk, D), lambda b, j: (b, j, 0)),
                  pl.BlockSpec((1, D), lambda b, j: (0, 0)),
                  pl.BlockSpec((1, D), lambda b, j: (0, 0)),
                  pl.BlockSpec((D, 2 * D), lambda b, j: (0, 0)),
                  pl.BlockSpec((1, 2 * D), lambda b, j: (0, 0))],
        out_specs=[pl.BlockSpec((1, heads, TLk, hd), lambda b, j: (b, 0, j, 0)),
                   pl.BlockSpec((1, heads, TLk, hd), lambda b, j: (b, 0, j, 0))],
        compiler_params=_cparams(("parallel", "parallel")),
    )(x, kb["ln1w"], kb["ln1b"], kb["wkv"], kb["bkv"])


def apply_attn(x, k, v, kb, kmask, heads, TL):
    B, Lp, D = x.shape
    Lkp = k.shape[2]
    hd = D // heads
    kern = functools.partial(attn_kernel, heads=heads)
    return pl.pallas_call(
        kern,
        out_shape=jax.ShapeDtypeStruct((B, Lp, D), jnp.bfloat16),
        grid=(B, Lp // TL),
        in_specs=[pl.BlockSpec((1, TL, D), lambda b, l: (b, l, 0)),          # residual x
                  pl.BlockSpec((1, D), lambda b, l: (0, 0)),                 # ln1w
                  pl.BlockSpec((1, D), lambda b, l: (0, 0)),                 # ln1b
                  pl.BlockSpec((D, D), lambda b, l: (0, 0)),                 # wq (scaled)
                  pl.BlockSpec((1, D), lambda b, l: (0, 0)),                 # bq (scaled)
                  pl.BlockSpec((1, heads, Lkp, hd), lambda b, l: (b, 0, 0, 0)),  # K (per b)
                  pl.BlockSpec((1, heads, Lkp, hd), lambda b, l: (b, 0, 0, 0)),  # V (per b)
                  pl.BlockSpec((1, Lkp), lambda b, l: (0, 0)),               # key mask
                  pl.BlockSpec((D, D), lambda b, l: (0, 0)),                 # wo
                  pl.BlockSpec((1, D), lambda b, l: (0, 0))],                # bo
        out_specs=pl.BlockSpec((1, TL, D), lambda b, l: (b, l, 0)),
        compiler_params=_cparams(("parallel", "parallel")),
    )(x, kb["ln1w"], kb["ln1b"], kb["wq"], kb["bq"], k, v, kmask, kb["wo"], kb["bo"])


def apply_mlp(y, kb, TL):
    B, Lp, D = y.shape
    F = kb["w1"].shape[1]
    vmem = _vmem_limit_bytes()
    w_bytes = 2 * D * F * 2                                # w1 + w2, bf16
    if 2 * w_bytes <= vmem // 2:
        # Resident weights (constant index map -> fetched once): v5e/v6e or small widths.
        return pl.pallas_call(
            mlp_kernel_resident,
            out_shape=jax.ShapeDtypeStruct((B, Lp, D), jnp.bfloat16),
            grid=(B, Lp // TL),
            in_specs=[pl.BlockSpec((1, TL, D), lambda b, l: (b, l, 0)),
                      pl.BlockSpec((1, D), lambda b, l: (0, 0)),
                      pl.BlockSpec((1, D), lambda b, l: (0, 0)),
                      pl.BlockSpec((D, F), lambda b, l: (0, 0)),
                      pl.BlockSpec((1, F), lambda b, l: (0, 0)),
                      pl.BlockSpec((F, D), lambda b, l: (0, 0)),
                      pl.BlockSpec((1, D), lambda b, l: (0, 0))],
            out_specs=pl.BlockSpec((1, TL, D), lambda b, l: (b, l, 0)),
            compiler_params=_cparams(("parallel", "parallel")),
        )(y, kb["ln2w"], kb["ln2b"], kb["w1"], kb["b1"], kb["w2"], kb["b2"])

    # Panel-streamed path (v7x / very large widths): whole padded sequence per block so
    # each weight panel streams once per batch element.
    TF = 512 if F % 512 == 0 else (256 if F % 256 == 0 else (128 if F % 128 == 0 else F))
    return pl.pallas_call(
        mlp_kernel_streamed,
        out_shape=jax.ShapeDtypeStruct((B, Lp, D), jnp.bfloat16),
        grid=(B, F // TF),
        in_specs=[pl.BlockSpec((1, Lp, D), lambda b, f: (b, 0, 0)),
                  pl.BlockSpec((1, D), lambda b, f: (0, 0)),
                  pl.BlockSpec((1, D), lambda b, f: (0, 0)),
                  pl.BlockSpec((D, TF), lambda b, f: (0, f)),   # w1 column panel
                  pl.BlockSpec((1, TF), lambda b, f: (0, f)),
                  pl.BlockSpec((TF, D), lambda b, f: (f, 0)),   # w2 row panel
                  pl.BlockSpec((1, D), lambda b, f: (0, 0))],
        out_specs=pl.BlockSpec((1, Lp, D), lambda b, f: (b, 0, 0)),
        scratch_shapes=[pltpu.VMEM((Lp, D), jnp.bfloat16),
                        pltpu.VMEM((Lp, D), jnp.float32)],
        compiler_params=_cparams(("parallel", "arbitrary")),
    )(y, kb["ln2w"], kb["ln2b"], kb["w1"], kb["b1"], kb["w2"], kb["b2"])


def apply_post(x, lnw, lnb, proj, TL, n_tiles):
    B, Lp, D = x.shape
    E = proj.shape[1]
    return pl.pallas_call(
        post_kernel,
        out_shape=jax.ShapeDtypeStruct((B, n_tiles * TL, E), jnp.float32),
        grid=(B, n_tiles),
        in_specs=[pl.BlockSpec((1, TL, D), lambda b, l: (b, l, 0)),
                  pl.BlockSpec((1, D), lambda b, l: (0, 0)),
                  pl.BlockSpec((1, D), lambda b, l: (0, 0)),
                  pl.BlockSpec((D, E), lambda b, l: (0, 0))],
        out_specs=pl.BlockSpec((1, TL, E), lambda b, l: (b, l, 0)),
        compiler_params=_cparams(("parallel", "parallel")),
    )(x, lnw, lnb, proj)


# ---------------------------- parameters / glue ----------------------------

def make_params(embed_dim, resolution, layers, width, patch, key):
    g = resolution // patch
    L = g * g + 1
    keys = iter(jax.random.split(key, 4 + 8 * layers))

    def rn(shape, scale=0.02):
        return (scale * jax.random.normal(next(keys), shape)).astype(jnp.float32)

    params = {
        "conv_w": rn((width, 3, patch, patch)),          # conv1.weight (no bias)
        "class_emb": rn((width,)),
        "pos_emb": rn((L, width)),
        "ln_pre": (jnp.ones((1, width), jnp.float32), jnp.zeros((1, width), jnp.float32)),
        "ln_post": (jnp.ones((1, width), jnp.float32), jnp.zeros((1, width), jnp.float32)),
    }
    blocks = []
    for _ in range(layers):
        blocks.append(dict(
            ln1w=jnp.ones((1, width), jnp.float32), ln1b=jnp.zeros((1, width), jnp.float32),
            wqkv=rn((width, 3 * width)), bqkv=rn((1, 3 * width)),   # in_proj (pre-transposed)
            wo=rn((width, width)), bo=rn((1, width)),               # out_proj (pre-transposed)
            ln2w=jnp.ones((1, width), jnp.float32), ln2b=jnp.zeros((1, width), jnp.float32),
            w1=rn((width, 4 * width)), b1=rn((1, 4 * width)),       # mlp.c_fc
            w2=rn((4 * width, width)), b2=rn((1, width)),           # mlp.c_proj
        ))
    params["blocks"] = blocks
    params["proj"] = rn((width, embed_dim))
    return params


def _extract_patches(image, patch):
    B, C, H, W = image.shape
    g = H // patch
    xp = image.reshape(B, C, g, patch, g, patch).transpose(0, 2, 4, 1, 3, 5)
    return xp.reshape(B, g * g, C * patch * patch).astype(jnp.float32), g


def pack_image_encoder(params, heads, patch, resolution):
    """One-time weight packing: bf16 casts, q/kv split, scale baking, padded constants."""
    f32, bf = jnp.float32, jnp.bfloat16
    width = params["conv_w"].shape[0]
    hd = width // heads
    g = resolution // patch
    L = g * g + 1
    K = 3 * patch * patch
    TL = _choose_tl(L)
    Lp = _round_up(L, TL)        # query/residual padding (token-tile multiple)
    Lkp = _round_up(L, 16)       # key/value padding (bf16 sublane granularity only)
    Kp = _round_up(K, 128)
    scale = 1.0 / math.sqrt(hd)

    w_pe = params["conv_w"].reshape(width, -1).T                       # [K, width]
    w_pe = jnp.zeros((Kp, width), f32).at[:K].set(w_pe).astype(bf)

    token_bias = jnp.zeros((Lp, width), f32)
    token_bias = token_bias.at[0].set(params["class_emb"] + params["pos_emb"][0])
    token_bias = token_bias.at[1:L].set(params["pos_emb"][1:])

    kmask = jnp.where(jnp.arange(Lkp) < L, 0.0, NEG_INF).astype(f32).reshape(1, Lkp)

    blocks = []
    for blk in params["blocks"]:
        wqkv, bqkv = blk["wqkv"], blk["bqkv"]
        blocks.append(dict(
            ln1w=blk["ln1w"], ln1b=blk["ln1b"],
            wq=(wqkv[:, :width] * scale).astype(bf), bq=bqkv[:, :width] * scale,
            wkv=wqkv[:, width:].astype(bf), bkv=bqkv[:, width:],       # fused K|V
            wo=blk["wo"].astype(bf), bo=blk["bo"],
            ln2w=blk["ln2w"], ln2b=blk["ln2b"],
            w1=blk["w1"].astype(bf), b1=blk["b1"],
            w2=blk["w2"].astype(bf), b2=blk["b2"],
        ))

    return dict(heads=heads, patch=patch, width=width, L=L, K=K,
                TL=TL, Lp=Lp, Lkp=Lkp, Kp=Kp,
                w_pe=w_pe, token_bias=token_bias, kmask=kmask,
                ln_pre=params["ln_pre"], ln_post=params["ln_post"],
                proj=params["proj"].astype(bf), blocks=blocks)


def image_encoder_forward(image, packed, return_tokens=False):
    B = image.shape[0]
    patch, width, heads = packed["patch"], packed["width"], packed["heads"]
    L, K, TL, Lp, Lkp, Kp = (packed[k] for k in ("L", "K", "TL", "Lp", "Lkp", "Kp"))
    hd = width // heads

    xp, _ = _extract_patches(image, patch)                    # [B, G*G, K]
    # Padded patch matrix: row 0 (cls slot) and tail rows are zero.
    xp_full = (jnp.zeros((B, Lp, Kp), jnp.float32)
               .at[:, 1:L, :K].set(xp).astype(jnp.bfloat16))

    x = fused_embed(xp_full, packed["w_pe"], packed["token_bias"],
                    packed["ln_pre"][0], packed["ln_pre"][1], TL)       # bf16 residual

    for kb in packed["blocks"]:
        k, v = apply_kv(x, kb, Lkp, heads, hd)                # head-major K/V, bf16
        x = apply_attn(x, k, v, kb, packed["kmask"], heads, TL)
        x = apply_mlp(x, kb, TL)

    n_tiles = (Lp // TL) if return_tokens else 1              # cls lives in tile 0
    feats = apply_post(x, packed["ln_post"][0], packed["ln_post"][1],
                       packed["proj"], TL, n_tiles)
    embedding = feats[:, 0, :]
    if return_tokens:
        return embedding, feats[:, 1:L, :]
    return embedding


# --------------------------- pure-JAX reference ----------------------------

def reference_forward(image, params, heads, patch):
    # Numerics-matched reference: bf16 MXU operands, f32 accumulation, exact softmax,
    # and bf16 residual handoffs mirrored at the same kernel boundaries.
    f32, bf = jnp.float32, jnp.bfloat16

    def bdot(a, b):
        return jax.lax.dot_general(a.astype(bf), b.astype(bf),
                                   (((a.ndim - 1,), (0,)), ((), ())),
                                   preferred_element_type=f32)

    B = image.shape[0]
    xp, g = _extract_patches(image, patch)
    width = params["conv_w"].shape[0]
    w_pe = params["conv_w"].reshape(width, -1).T
    feats = bdot(xp, w_pe)                                   # [B, G*G, width]
    cls = jnp.broadcast_to(params["class_emb"][None, None, :], (B, 1, width))
    x = jnp.concatenate([cls, feats], axis=1) + params["pos_emb"][None]
    x = _ln(x, *params["ln_pre"]).astype(bf)
    hd = width // heads
    scale = 1.0 / math.sqrt(hd)
    for blk in params["blocks"]:
        xf = x.astype(f32)
        h = _ln(xf, blk["ln1w"], blk["ln1b"])
        qkv = bdot(h, blk["wqkv"]) + blk["bqkv"]
        q, k, v = jnp.split(qkv, 3, axis=-1)
        q = q.reshape(B, -1, heads, hd).transpose(0, 2, 1, 3)
        k = k.reshape(B, -1, heads, hd).transpose(0, 2, 1, 3)
        v = v.reshape(B, -1, heads, hd).transpose(0, 2, 1, 3)
        s = jnp.einsum("bhqd,bhkd->bhqk", q.astype(bf), k.astype(bf),
                       preferred_element_type=f32) * scale
        p = jax.nn.softmax(s, axis=-1)
        a = jnp.einsum("bhqk,bhkd->bhqd", p.astype(bf), v.astype(bf),
                       preferred_element_type=f32)
        a = a.transpose(0, 2, 1, 3).reshape(B, -1, width)
        x = (xf + bdot(a, blk["wo"]) + blk["bo"]).astype(bf)
        xf = x.astype(f32)
        h2 = _ln(xf, blk["ln2w"], blk["ln2b"])
        m = bdot(h2, blk["w1"]) + blk["b1"]
        m = m * jax.nn.sigmoid(1.702 * m)
        x = (xf + bdot(m, blk["w2"]) + blk["b2"]).astype(bf)
    x = bdot(_ln(x.astype(f32), *params["ln_post"]), params["proj"])
    return x[:, 0, :]


# --------------------------------- main ------------------------------------

if __name__ == "__main__":
    # configs[:5] = (embed_dim, image_resolution, vision_layers, vision_width, patch_size)
    embed_dim, resolution, layers, width, patch = 32, 16, 2, 64, 8
    heads = max(1, width // 64)               # = 1 for this small config

    key = jax.random.PRNGKey(0)
    kparams, kimg = jax.random.split(key)
    params = make_params(embed_dim, resolution, layers, width, patch, kparams)
    image = jax.random.normal(kimg, (2, 3, resolution, resolution), dtype=jnp.float32)

    packed = pack_image_encoder(params, heads, patch, resolution)   # one-time packing
    embedding = image_encoder_forward(image, packed)
    embedding = jax.block_until_ready(embedding)

    assert embedding.shape == (2, embed_dim)
    ref = reference_forward(image, params, heads, patch)
    max_err = float(jnp.max(jnp.abs(embedding - ref)))
    assert jnp.allclose(embedding, ref, atol=1e-2, rtol=1e-2), f"mismatch vs reference (max err {max_err})"

    print("KERNEL_OK")
</pallas_src>

<mosaic_0001>
module attributes {stable_mosaic.version = 11 : i64} {
  func.func @embed_kernel(%arg0: i32, %arg1: i32, %arg2: memref<1x16x256xbf16, #tpu.memory_space<vmem>>, %arg3: memref<256x64xbf16, #tpu.memory_space<vmem>>, %arg4: memref<16x64xf32, #tpu.memory_space<vmem>>, %arg5: memref<1x64xf32, #tpu.memory_space<vmem>>, %arg6: memref<1x64xf32, #tpu.memory_space<vmem>>, %arg7: memref<1x16x64xbf16, #tpu.memory_space<vmem>>) attributes {dimension_semantics = [#tpu.dimension_semantics<parallel>, #tpu.dimension_semantics<parallel>], iteration_bounds = array<i64: 2, 1>, scalar_prefetch = 0 : i64, scratch_operands = 0 : i64, tpu.core_type = #tpu.core_type<tc>, window_params = [{transform_indices = @transform_0, window_bounds = array<i64: 1, 16, 256>}, {pipeline_mode = #tpu.pipeline_mode<synchronous>, transform_indices = @transform_1, window_bounds = array<i64: 256, 64>}, {transform_indices = @transform_2, window_bounds = array<i64: 16, 64>}, {pipeline_mode = #tpu.pipeline_mode<synchronous>, transform_indices = @transform_3, window_bounds = array<i64: 1, 64>}, {pipeline_mode = #tpu.pipeline_mode<synchronous>, transform_indices = @transform_4, window_bounds = array<i64: 1, 64>}, {transform_indices = @transform_5, window_bounds = array<i64: 1, 16, 64>}]} {
    %c0 = arith.constant 0 : index
    %c0_0 = arith.constant 0 : index
    %c0_1 = arith.constant 0 : index
    %0 = vector.load %arg2[%c0, %c0_0, %c0_1] : memref<1x16x256xbf16, #tpu.memory_space<vmem>>, vector<1x16x256xbf16>
    %1 = vector.shape_cast %0 : vector<1x16x256xbf16> to vector<16x256xbf16>
    %c0_2 = arith.constant 0 : index
    %c0_3 = arith.constant 0 : index
    %2 = vector.load %arg3[%c0_2, %c0_3] : memref<256x64xbf16, #tpu.memory_space<vmem>>, vector<256x64xbf16>
    %cst = arith.constant dense<0.000000e+00> : vector<16x64xf32>
    %3 = tpu.matmul %1, %2, %cst {dimension_numbers = #tpu.dot_dimension_numbers<[1], [0], [0], [1], [0, 0, 1, 1], [], []>} : vector<16x256xbf16>, vector<256x64xbf16>, vector<16x64xf32> -> vector<16x64xf32>
    %c0_4 = arith.constant 0 : index
    %c0_5 = arith.constant 0 : index
    %4 = vector.load %arg4[%c0_4, %c0_5] : memref<16x64xf32, #tpu.memory_space<vmem>>, vector<16x64xf32>
    %5 = arith.addf %3, %4 : vector<16x64xf32>
    %c0_6 = arith.constant 0 : index
    %c0_7 = arith.constant 0 : index
    %6 = vector.load %arg5[%c0_6, %c0_7] : memref<1x64xf32, #tpu.memory_space<vmem>>, vector<1x64xf32>
    %c0_8 = arith.constant 0 : index
    %c0_9 = arith.constant 0 : index
    %7 = vector.load %arg6[%c0_8, %c0_9] : memref<1x64xf32, #tpu.memory_space<vmem>>, vector<1x64xf32>
    %cst_10 = arith.constant dense<0.000000e+00> : vector<16xf32>
    %8 = vector.multi_reduction <add>, %5, %cst_10 [1] : vector<16x64xf32> to vector<16xf32>
    %9 = vector.shape_cast %8 : vector<16xf32> to vector<16x1xf32>
    %cst_11 = arith.constant 6.400000e+01 : f32
    %10 = vector.broadcast %cst_11 : f32 to vector<16x1xf32>
    %11 = arith.divf %9, %10 : vector<16x1xf32>
    %12 = vector.broadcast %11 : vector<16x1xf32> to vector<16x64xf32>
    %13 = arith.subf %5, %12 : vector<16x64xf32>
    %14 = arith.mulf %13, %13 : vector<16x64xf32>
    %cst_12 = arith.constant dense<0.000000e+00> : vector<16xf32>
    %15 = vector.multi_reduction <add>, %14, %cst_12 [1] : vector<16x64xf32> to vector<16xf32>
    %16 = vector.shape_cast %15 : vector<16xf32> to vector<16x1xf32>
    %cst_13 = arith.constant 6.400000e+01 : f32
    %17 = vector.broadcast %cst_13 : f32 to vector<16x1xf32>
    %18 = arith.divf %16, %17 : vector<16x1xf32>
    %19 = vector.broadcast %11 : vector<16x1xf32> to vector<16x64xf32>
    %20 = arith.subf %5, %19 : vector<16x64xf32>
    %cst_14 = arith.constant 9.99999974E-6 : f32
    %21 = vector.broadcast %cst_14 : f32 to vector<16x1xf32>
    %22 = arith.addf %18, %21 : vector<16x1xf32>
    %23 = math.rsqrt %22 : vector<16x1xf32>
    %24 = vector.broadcast %23 : vector<16x1xf32> to vector<16x64xf32>
    %25 = arith.mulf %20, %24 : vector<16x64xf32>
    %26 = vector.broadcast %6 : vector<1x64xf32> to vector<16x64xf32>
    %27 = arith.mulf %25, %26 : vector<16x64xf32>
    %28 = vector.broadcast %7 : vector<1x64xf32> to vector<16x64xf32>
    %29 = arith.addf %27, %28 : vector<16x64xf32>
    %30 = arith.truncf %29 : vector<16x64xf32> to vector<16x64xbf16>
    %c0_15 = arith.constant 0 : index
    %c0_16 = arith.constant 0 : index
    %c0_17 = arith.constant 0 : index
    %31 = vector.load %arg7[%c0_15, %c0_16, %c0_17] : memref<1x16x64xbf16, #tpu.memory_space<vmem>>, vector<1x16x64xbf16>
    %32 = vector.shape_cast %31 : vector<1x16x64xbf16> to vector<16x64xbf16>
    %33 = vector.shape_cast %30 : vector<16x64xbf16> to vector<1x16x64xbf16>
    tpu.vector_store %arg7[%c0_15, %c0_16, %c0_17], %33 {strides = array<i32>} : memref<1x16x64xbf16, #tpu.memory_space<vmem>>, vector<1x16x64xbf16>,
    return
  }
  func.func @transform_0(%arg0: i32, %arg1: i32) -> (i32, i32, i32) {
    %c0_i32 = arith.constant 0 : i32
    %c0_i32_0 = arith.constant 0 : i32
    return %arg0, %arg1, %c0_i32 : i32, i32, i32
  }
  func.func @transform_1(%arg0: i32, %arg1: i32) -> (i32, i32) {
    %c0_i32 = arith.constant 0 : i32
    %c0_i32_0 = arith.constant 0 : i32
    %c0_i32_1 = arith.constant 0 : i32
    return %c0_i32, %c0_i32_0 : i32, i32
  }
  func.func @transform_2(%arg0: i32, %arg1: i32) -> (i32, i32) {
    %c0_i32 = arith.constant 0 : i32
    %c0_i32_0 = arith.constant 0 : i32
    return %arg1, %c0_i32 : i32, i32
  }
  func.func @transform_3(%arg0: i32, %arg1: i32) -> (i32, i32) {
    %c0_i32 = arith.constant 0 : i32
    %c0_i32_0 = arith.constant 0 : i32
    %c0_i32_1 = arith.constant 0 : i32
    return %c0_i32, %c0_i32_0 : i32, i32
  }
  func.func @transform_4(%arg0: i32, %arg1: i32) -> (i32, i32) {
    %c0_i32 = arith.constant 0 : i32
    %c0_i32_0 = arith.constant 0 : i32
    %c0_i32_1 = arith.constant 0 : i32
    return %c0_i32, %c0_i32_0 : i32, i32
  }
  func.func @transform_5(%arg0: i32, %arg1: i32) -> (i32, i32, i32) {
    %c0_i32 = arith.constant 0 : i32
    %c0_i32_0 = arith.constant 0 : i32
    return %arg0, %arg1, %c0_i32 : i32, i32, i32
  }
}

</mosaic_0001>

<bundles_post_ra>
// kernel: tpu_custom_call.1
= control target key start
LH: loop header
LB: loop body
LE: loop exit
PB: predicated region body
PF: predicated region fallthrough
CT: control target
= control target key end

     0   :  { %10 = vsyncpa [#allocation3], 0  ;;  %s1079_s0 = inlined_call_operand.vmem [shape: bf16[2,16,256], index: 0, kind: input, shape index: {}]   ;;  %s1080_s1 = inlined_call_operand.vmem [shape: bf16[256,64], index: 1, kind: input, shape index: {}]   ;;  %s1081_s2 = inlined_call_operand.vmem [shape: f32[16,64], index: 2, kind: input, shape index: {}]   ;;  %s1082_s3 = inlined_call_operand.vmem [shape: f32[1,64], index: 3, kind: input, shape index: {}]   ;;  %s1083_s4 = inlined_call_operand.vmem [shape: f32[1,64], index: 4, kind: input, shape index: {}]   ;;  %s1084_s5 = inlined_call_operand.hbm [shape: bf16[2,16,64], index: 5, kind: output, shape index: {}]  }
   0x1   :  { %12 = vsyncpa [#allocation3 + $0x1], 0  ;;  %s918_s18 = smov 0   ;;  %s920_s19 = smov 0  }
   0x2   :  { %s922_s20 = smov 0   ;;  %s924_s21 = smov 0  }
   0x3   :  { %s926_s22 = smov 0   ;;  %s928_s23 = smov 0  }
   0x4 LB: > { %s633_s24 = sadd.s32 4294967295, %s883_s23   ;;  %s634_s25 = sadd.s32 4294967294, %s883_s23   ;;  %s883_s23 = sphi %s928_s23, %s18_s23   ;;  %s879_s22 = sphi %s926_s22, %s1091_s22   ;;  %s875_s21 = sphi %s924_s21, %s1090_s21   ;;  %s871_s20 = sphi %s922_s20, %s1089_s20   ;;  %s867_s19 = sphi %s920_s19, %s1088_s19   ;;  %s863_s18 = sphi %s918_s18, %s1087_s18  }
   0x5   : > { %s30_s26 = sadd.s32 1, %s879_s22  ;;  %s156_s27 = sadd.s32 1, %s871_s20 }
   0x6   : > { %p32_p0 = scmp.ge.s32.totalorder %s30_s26, 2  ;;  %p166_p1 = scmp.ne.s32.totalorder %s871_s20, %s867_s19 }
   0x7   : > { %p167_p2 = scmp.eq.s32.totalorder %s633_s24, 1  ;;  %p172_p3 = scmp.ne.s32.totalorder %s867_s19, %s863_s18 }
   0x8   : > { %s1093_s26 = smov (%p32_p0, %s30_s26), 0  ;;  %p173_p5 = scmp.eq.s32.totalorder %s634_s25, 1 }
   0x9   : > { %p958_p4 = por %p167_p2, %p166_p1  ;;  %s151_s29 = ssub.s32 %s879_s22, %s1093_s26 }
   0xa   : > { %p638_p6 = scmp.ge.s32.totalorder %s883_s23, 1  ;;  %p154_p7 = scmp.eq.s32.totalorder %s151_s29, 0 }
   0xb   : > { %p965_p8 = por %p173_p5, %p172_p3  ;;  %p223_p9 = scmp.lt.s32.totalorder %s883_s23, 3 }
   0xc   : > { %s971_s6 = scalar_select %p154_p7, %s871_s20, %s156_s27  }
   0xd   : > { %p224_p10 = pnand %p638_p6, %p223_p9 }
   0xe   : > { %p262_p11 = scmp.lt.s32.totalorder (!%p224_p10), %s875_s21, 1  ;;  %s258_s27 = sand.u32 (!%p224_p10), 1, %s867_s19  }
   0xf   : > { %227 = sbr.rel (%p224_p10) target bundleno = 464 (0x1d0), region = 40  ;;  %s639_s8 = sshll.u32 (!%p224_p10), %s258_s27, 3 }
  0x10   : > { %s825_s29 = scalar_lea.hbm (!%p224_p10), %s1084_s5, 16 }
  0x14   : > { %v729_v0 = vld [vmem:[%s1080_s1 + $0x38] sm:$0xff]  ;;  %v728_v2 = vld [vmem:[%s1080_s1 + $0x30] sm:$0xff]  ;;  %v727_v4 = vld [vmem:[%s1080_s1 + $0x28] sm:$0xff]  ;;  %s263_s12 = scalar_select %p262_p11, %s875_s21, 1  ;;  %vm451_vm0 = vcmask 523264   ;;  %v885_v34 = vmov 64.0  }
  0x15   : > { %v737_v1 = vld [vmem:[%s1080_s1 + $0x78] sm:$0xff]  ;;  %421 = vmatpush.bf16.msra.mxu0 %v729_v0  ;;  %v736_v3 = vld [vmem:[%s1080_s1 + $0x70] sm:$0xff]  ;;  %v735_v5 = vld [vmem:[%s1080_s1 + $0x68] sm:$0xff]  ;;  %799 = vrcp.f32 %v885_v34  ;;  %vm515_vm7 = vcmask 519168  }
  0x16   : > { %435 = vmatpush.bf16.msra.mxu1 %v737_v1  ;;  %v726_v6 = vld [vmem:[%s1080_s1 + $0x20] sm:$0xff]  ;;  %v725_v8 = vld [vmem:[%s1080_s1 + $0x18] sm:$0xff]  ;;  %v724_v10 = vld [vmem:[%s1080_s1 + $0x10] sm:$0xff]  ;;  %s719_s17 = sshll.u32 %s263_s12, 4  ;;  %s260_s12 = scalar_lea.vmem [#allocation2], %s639_s8 }
  0x17   : > { %v734_v7 = vld [vmem:[%s1080_s1 + $0x60] sm:$0xff]  ;;  %v733_v9 = vld [vmem:[%s1080_s1 + $0x58] sm:$0xff]  ;;  %v732_v11 = vld [vmem:[%s1080_s1 + $0x50] sm:$0xff]  ;;  %s270_s9 = scalar_lea.vmem %s1079_s0, %s719_s17  ;;  %s533_s14 = sshll.u32 %s260_s12, 4  ;;  %s534_s14 = int_to_ptr.vmem [resolvable:$true] %s533_s14 }
  0x18   : > { %v723_v12 = vld [vmem:[%s1080_s1 + $0x8] sm:$0xff]  ;;  %v722_v14 = vld [vmem:[%s1080_s1] sm:$0xff] }
  0x19   : > { %422 = vmatpush.bf16.msra.mxu0 %v728_v2  ;;  %v731_v13 = vld [vmem:[%s1080_s1 + $0x48] sm:$0xff]  ;;  %v730_v15 = vld [vmem:[%s1080_s1 + $0x40] sm:$0xff] }
  0x1a   : > { %436 = vmatpush.bf16.msra.mxu1 %v736_v3  ;;  %v644_v16 = vld [vmem:[%s270_s9] sm:$0xf]  ;;  %v721_v17 = vld [vmem:[%s270_s9 + $0x4] sm:$0xf0]  ;;  %v720_v18 = vld [vmem:[%s270_s9 + $0x4] sm:$0xf] }
  0x1b   : > { %v646_v19 = vld [vmem:[%s270_s9 + $0x8] sm:$0xf0]  ;;  %v645_v20 = vor.u32 %v721_v17, %v644_v16  ;;  %v313_v22 = vld [vmem:[%s1081_s2] sm:$0xff]  ;;  %v800_v35 = vpop.eup %799  ;;  %s738_s9 = sshll.u32 %s875_s21, 3  ;;  %s519_s21 = scalar_lea.sflag [#allocation3], %s258_s27 }
  0x1c   : > { %v649_v21 = vor.u32 %v720_v18, %v646_v19  ;;  %v314_v28 = vld [vmem:[%s1081_s2 + $0x8] sm:$0xff]  ;;  %v459_v36 = vmul.f32 64.0, %v800_v35  ;;  %vm463_vm1 = vweird.f32 %v800_v35  ;;  %v797_v1 = vld [vmem:[%s1082_s3] ss:$0 sm:$0xff]  ;;  %s532_s13 = scalar_lea.hbm %s1084_s5, %s738_s9 }
  0x1d   : > { %423 = vmatpush.bf16.msra.mxu0 %v727_v4  ;;  %v798_v4 = vld [vmem:[%s1083_s4] ss:$0 sm:$0xff]  ;;  %s535_s15 = sshll.u32 %s532_s13, 4  ;;  %s536_s15 = int_to_ptr.hbm [resolvable:$true] %s535_s15 }
  0x1e   : > { %437 = vmatpush.bf16.msra.mxu1 %v735_v5  ;;  %v460_v37 = vsub.f32 1.0, %v459_v36  ;;  %s819_s16 = sshra.s32 %s536_s15, 4  ;;  %s820_s16 = int_to_ptr.hbm [resolvable:$true] %s819_s16 }
  0x1f   : > { %s821_s17 = scalar_lea.hbm %s820_s16, 8  ;;  %p826_p1 = scmp.lt.s32.totalorder %s820_s16, %s1084_s5 }
  0x20   : > { %v461_v38 = vmul.f32 %v800_v35, %v460_v37  ;;  %p822_p12 = scmp.ne.s32.totalorder %s820_s16, %s821_s17  ;;  %p827_p2 = scmp.lt.s32.totalorder %s825_s29, %s821_s17 }
  0x21   : > { %424 = vmatpush.bf16.msra.mxu0 %v726_v6 }
  0x22   : > { %438 = vmatpush.bf16.msra.mxu1 %v734_v7  ;;  %v462_v39 = vadd.f32 %v800_v35, %v461_v38  ;;  %p823_p13 = pnand %p822_p12, %p958_p4  ;;  %p828_p3 = por %p827_p2, %p826_p1 }
  0x24   : > { %v464_v40 = vsel %vm463_vm1, %v800_v35, %v462_v39  ;;  %p824_p0 = pneg %p823_p13 }
  0x25   : > { %425 = vmatpush.bf16.msra.mxu0 %v725_v8 }
  0x26   : > { %439 = vmatpush.bf16.msra.mxu1 %v733_v9  ;;  %p829_p5 = pnand %p828_p3, %p824_p0 }
  0x29   : > { %426 = vmatpush.bf16.msra.mxu0 %v724_v10 }
  0x2a   : > { %440 = vmatpush.bf16.msra.mxu1 %v732_v11 }
  0x2d   : > { %427 = vmatpush.bf16.msra.mxu0 %v723_v12 }
  0x2e   : > { %441 = vmatpush.bf16.msra.mxu1 %v731_v13 }
  0x31   : > { %428 = vmatpush.bf16.msra.mxu0 %v722_v14 }
  0x32   : > { %442 = vmatpush.bf16.msra.mxu1 %v730_v15 }
  0x34   : > { %429 = vmatmul.bf16.vlgmr.msra.gmra.mxu0 %v645_v20 }
  0x35   : > { %443 = vmatmul.bf16.vlgmr.msra.gmra.mxu1 %v649_v21 }
  0xb1   : > { %v430_v23 = vpop.f32.mrf.mxu0 }
  0xb2   : > { %v444_v24 = vpop.f32.mrf.mxu1  ;;  %v431_v25 = vadd.f32 %v430_v23, %v313_v22 }
  0xb4   : > { %v445_v26 = vadd.f32 %v444_v24, %v431_v25 }
  0xb6   : > { %v452_v27 = vsel %vm451_vm0, %v445_v26, 0.0 }
  0xb7   : > { %453 = vadd.xlane.f32.xlu0 %v452_v27 }
  0xb9   : > { %v432_v29 = vpop.f32.mrf.mxu0 }
  0xba   : > { %v433_v30 = vadd.f32 %v432_v29, %v314_v28  ;;  %v446_v31 = vpop.f32.mrf.mxu1 }
  0xbc   : > { %v447_v32 = vadd.f32 %v446_v31, %v433_v30 }
  0xbe   : > { %v455_v33 = vsel %vm451_vm0, %v447_v32, 0.0 }
  0xbf   : > { %456 = vadd.xlane.f32.xlu0 %v455_v33 }
 0x12a   : > { %v454_v41 = vpop.xlane.xlu0 %453 }
 0x12b   : > { %v465_v42 = vmul.f32 %v464_v40, %v454_v41 }
 0x12d   : > { %v467_v43 = vsub.f32 %v445_v26, %v465_v42 }
 0x12f   : > { %v469_v44 = vmul.f32 %v467_v43, %v467_v43 }
 0x131   : > { %v471_v45 = vsel %vm451_vm0, %v469_v44, 0.0 }
 0x132   : > { %472 = vadd.xlane.f32.xlu1 %v471_v45  ;;  %v457_v46 = vpop.xlane.xlu0 %456 }
 0x133   : > { %v466_v47 = vmul.f32 %v464_v40, %v457_v46 }
 0x135   : > { %v468_v48 = vsub.f32 %v447_v32, %v466_v47 }
 0x137   : > { %v470_v49 = vmul.f32 %v468_v48, %v468_v48 }
 0x139   : > { %v474_v50 = vsel %vm451_vm0, %v470_v49, 0.0 }
 0x13a   : > { %475 = vadd.xlane.f32.xlu1 %v474_v50 }
 0x1a5   : > { %v473_v51 = vpop.xlane.xlu1 %472 }
 0x1a6   : > { %v477_v52 = vmul.f32 %v473_v51, %v464_v40 }
 0x1a8   : > { %v479_v53 = vadd.f32 1e-05, %v477_v52 }
 0x1aa   : > { %801 = vrsqrt.f32 %v479_v53  ;;  %vm487_vm3 = vweird.f32 %v479_v53 }
 0x1ad   : > { %v476_v54 = vpop.xlane.xlu1 %475 }
 0x1ae   : > { %v478_v55 = vmul.f32 %v476_v54, %v464_v40 }
 0x1b0   : > { %v802_v56 = vpop.eup %801  ;;  %v480_v57 = vadd.f32 1e-05, %v478_v55 }
 0x1b1   : > { %v482_v58 = vmul.f32 %v802_v56, %v479_v53  ;;  %vm488_vm2 = vweird.f32 %v802_v56 }
 0x1b2   : > { %803 = vrsqrt.f32 %v480_v57  ;;  %vm489_vm4 = vmor %vm487_vm3, %vm488_vm2  ;;  %vm497_vm6 = vweird.f32 %v480_v57 }
 0x1b3   : > { %v483_v59 = vmul.f32 %v802_v56, %v482_v58 }
 0x1b5   : > { %v484_v60 = vmul.f32 0.5, %v483_v59 }
 0x1b7   : > { %v485_v61 = vsub.f32 1.5, %v484_v60 }
 0x1b8   : > { %v804_v62 = vpop.eup %803 }
 0x1b9   : > { %v486_v63 = vmul.f32 %v802_v56, %v485_v61  ;;  %v492_v0 = vmul.f32 %v804_v62, %v480_v57  ;;  %vm498_vm5 = vweird.f32 %v804_v62 }
 0x1ba   : > { %vm499_vm8 = vmor %vm497_vm6, %vm498_vm5 }
 0x1bb   : > { %v490_v2 = vsel %vm489_vm4, %v802_v56, %v486_v63  ;;  %v493_v3 = vmul.f32 %v804_v62, %v492_v0 }
 0x1bc   : > { %v501_v5 = vmul.f32 %v490_v2, %v467_v43 }
 0x1bd   : > { %v494_v6 = vmul.f32 0.5, %v493_v3 }
 0x1be   : > { %v506_v7 = vmul.f32 %v797_v1, %v501_v5 }
 0x1bf   : > { %v495_v8 = vsub.f32 1.5, %v494_v6 }
 0x1c0   : > { %v511_v9 = vadd.f32 %v798_v4, %v506_v7 }
 0x1c1   : > { %v496_v10 = vmul.f32 %v804_v62, %v495_v8 }
 0x1c2   : > { %v513_v11 = vpack.c.bf16 %v511_v9, %v511_v9 }
 0x1c3   : > { %v500_v12 = vsel %vm499_vm8, %v804_v62, %v496_v10 }
 0x1c4   : > { %v502_v13 = vmul.f32 %v500_v12, %v468_v48  ;;  %516 = vst.msk [vmem:[%s260_s12] sm:$0xf] %vm515_vm7, %v513_v11 }
 0x1c6   : > { %v507_v14 = vmul.f32 %v797_v1, %v502_v13 }
 0x1c8   : > { %v512_v15 = vadd.f32 %v798_v4, %v507_v14 }
 0x1ca   : > { %v514_v16 = vpack.c.bf16 %v512_v15, %v512_v15 }
 0x1cc   : > { %517 = vst.msk [vmem:[%s260_s12 + $0x4] sm:$0xf] %vm515_vm7, %v514_v16 }
 0x1cd   : > { %832 = shalt.err (!%p829_p5)
}
 0x1ce   : > { %s886_s27 = smov 64   ;;  %s887_s9 = smov 4  }
 0x1cf   : > { %739 = dma.vmem_to_hbm [thread:$0]  (%p958_p4), %s534_s14, 128, %s536_s15, %s519_s21, %s886_s27, %s886_s27, %s887_s9  }
 0x1d0 PF: > { %p745_p6 = scmp.ge.s32.totalorder %s883_s23, 2  ;;  %s550_s10 = sand.u32 1, %s863_s18  }
 0x1d1   : > { %s551_s11 = scalar_lea.sflag [#allocation3], %s550_s10 }
 0x1d2   : > { %p742_p7 = pnand %p745_p6, %p965_p8 }
 0x1d4   : > { %p743_p9 = pneg %p742_p7 }
 0x1d6   : > { %858 = dma.done.wait (%p743_p9), %s551_s11, 128  }
 0x1d7   : > { %860 = vsyncadd (%p743_p9), %s551_s11, 4294967168  ;;  %s18_s23 = sadd.s32 1, %s883_s23   ;;  %s1087_s18 = smov %s867_s19 }
 0x1d8   : > { %p15_p10 = scmp.ge.s32.totalorder %s18_s23, 4   ;;  %s1088_s19 = smov %s871_s20 }
 0x1d9   : > { %s1089_s20 = smov %s971_s6  ;;  %s1090_s21 = smov %s879_s22 }
 0x1da   : > { %s1091_s22 = smov %s1093_s26  ;;  %17 = sbr.rel (!%p15_p10) target bundleno = 4 (0x4), region = 78 }
 0x1df   :  { %557 = vsyncpa [#allocation3], 1 }
 0x1e0   :  { %559 = vsyncpa [#allocation3 + $0x1], 1 }

</bundles_post_ra>
